<compile_context>
chip_gen: v7x
topology: tpu7x:2x2x1
jax: 0.10.0
libtpu: 0.0.40
codegen_flags: <defaults>
</compile_context>

<pallas_src>
import jax
import jax.numpy as jnp
from jax.experimental import pallas as pl
from jax.experimental.pallas import tpu as pltpu

N_EMBD = 512
DOWN_SIZE = 256


# ----------------------------- kernel bodies ------------------------------ #

def _adapter_body(x_ref, wd_ref, bd_ref, wu_ref, bu_ref, o_ref, res_ref=None):
    # x_ref:  (TM, 512) f32/bf16   wd_ref: (512, 256) bf16   bd_ref: (1, 256) f32
    # wu_ref: (256, 512) bf16      bu_ref: (1, 512) f32      o_ref:  (TM, 512)
    x = x_ref[...].astype(jnp.bfloat16)                       # no-op if already bf16
    down = jnp.dot(x, wd_ref[...],
                   preferred_element_type=jnp.float32) + bd_ref[...]
    down = jnp.maximum(down, 0.0)                             # ReLU (f32, VPU)
    up = jnp.dot(down.astype(jnp.bfloat16), wu_ref[...],
                 preferred_element_type=jnp.float32) + bu_ref[...]
    if res_ref is not None:                                   # fused residual add
        up = up + res_ref[...].astype(jnp.float32)
    o_ref[...] = up.astype(o_ref.dtype)


def _adapter_kernel(x_ref, wd_ref, bd_ref, wu_ref, bu_ref, o_ref):
    _adapter_body(x_ref, wd_ref, bd_ref, wu_ref, bu_ref, o_ref)


def _adapter_residual_kernel(x_ref, wd_ref, bd_ref, wu_ref, bu_ref, res_ref, o_ref):
    _adapter_body(x_ref, wd_ref, bd_ref, wu_ref, bu_ref, o_ref, res_ref=res_ref)


# ----------------------------- tile selection ------------------------------ #

def _num_tensorcores():
    """Best-effort TensorCore count (2 on v7x, 1 on v5e/v6e)."""
    try:
        info = pltpu.get_tpu_info()
        for name in ("num_tensorcores", "tensorcore_count", "num_cores", "core_count"):
            n = getattr(info, name, None)
            if isinstance(n, int) and n > 0:
                return n
    except Exception:
        pass
    try:
        kind = jax.devices()[0].device_kind.lower()
        if "v7" in kind:
            return 2
    except Exception:
        pass
    return 1


def _pick_tile(batch, n_cores):
    """Largest row tile; keep >= n_cores grid blocks only on multi-TC chips.
    Floor is 16 rows (bf16 packs 16 sublanes per vreg)."""
    min_blocks = max(1, n_cores)
    for tm in (1024, 512, 256, 128, 64, 32, 16):
        if tm == 1024 and batch < 2048:
            continue                       # 1024-row tiles only pay off for big B
        if batch >= min_blocks * tm:
            return tm
    return 16


# ----------------------------- host wrappers ------------------------------- #

def prepare_adapter_params(w_down, b_down, w_up, b_up):
    """Hoisted one-time param prep: bf16 weights, f32 (1, N) biases.
    Weights in (in, out) layout (PyTorch Linear.weight transposed)."""
    return (jnp.asarray(w_down).astype(jnp.bfloat16),
            jnp.asarray(b_down, jnp.float32).reshape(1, DOWN_SIZE),
            jnp.asarray(w_up).astype(jnp.bfloat16),
            jnp.asarray(b_up, jnp.float32).reshape(1, N_EMBD))


def adapter_forward(x, w_down, b_down, w_up, b_up, *, add_residual=False,
                    residual=None, out_dtype=None, num_cores=None):
    """x: (B, 512) f32 or bf16.  Weights ideally pre-cast via
    prepare_adapter_params (the casts below are no-ops in that case).
    Returns (B, 512) in out_dtype (default: x.dtype)."""
    B, D = x.shape
    assert D == N_EMBD
    out_dtype = x.dtype if out_dtype is None else out_dtype

    # Capture residual default (original x) BEFORE any padding.
    res = None
    if add_residual:
        res = x if residual is None else residual

    # No-ops when params were prepared once up front.
    wd = jnp.asarray(w_down).astype(jnp.bfloat16)
    wu = jnp.asarray(w_up).astype(jnp.bfloat16)
    bd = jnp.asarray(b_down, jnp.float32).reshape(1, DOWN_SIZE)
    bu = jnp.asarray(b_up, jnp.float32).reshape(1, N_EMBD)

    n_cores = _num_tensorcores() if num_cores is None else num_cores
    tm = _pick_tile(B, n_cores)

    # Only batches smaller than one tile (B < 16) get padded; everything else
    # relies on Pallas partial-last-block handling (rows are independent).
    sliced = False
    if B < tm:
        x = jnp.pad(x, ((0, tm - B), (0, 0)))
        if res is not None:
            res = jnp.pad(res, ((0, tm - B), (0, 0)))
        sliced = True
    rows = x.shape[0]
    grid = pl.cdiv(rows, tm)

    row_spec = pl.BlockSpec((tm, N_EMBD), lambda i: (i, 0))
    in_specs = [
        row_spec,                                             # x tile
        pl.BlockSpec((N_EMBD, DOWN_SIZE), lambda i: (0, 0)),  # W_down (bf16)
        pl.BlockSpec((1, DOWN_SIZE), lambda i: (0, 0)),       # b_down (f32)
        pl.BlockSpec((DOWN_SIZE, N_EMBD), lambda i: (0, 0)),  # W_up   (bf16)
        pl.BlockSpec((1, N_EMBD), lambda i: (0, 0)),          # b_up   (f32)
    ]
    operands = [x, wd, bd, wu, bu]
    kernel = _adapter_kernel
    if res is not None:
        in_specs.append(row_spec)                             # residual tile
        operands.append(res)
        kernel = _adapter_residual_kernel

    out = pl.pallas_call(
        kernel,
        out_shape=jax.ShapeDtypeStruct((rows, N_EMBD), out_dtype),
        grid_spec=pltpu.PrefetchScalarGridSpec(
            num_scalar_prefetch=0,
            grid=(grid,),
            in_specs=in_specs,
            out_specs=row_spec,
        ),
        compiler_params=pltpu.CompilerParams(
            dimension_semantics=("parallel",),
            vmem_limit_bytes=32 * 1024 * 1024,
        ),
    )(*operands)

    if sliced:
        out = out[:B]
    return out


def init_params(key):
    """Deterministic synthetic parameters matching nn.Linear shapes.
    PyTorch stores Linear.weight as (out, in); we build (in, out) directly."""
    k1, k2, k3, k4 = jax.random.split(key, 4)
    w_down = jax.random.normal(k1, (N_EMBD, DOWN_SIZE), jnp.float32) * 0.02
    b_down = jax.random.normal(k2, (DOWN_SIZE,), jnp.float32) * 0.01
    w_up = jax.random.normal(k3, (DOWN_SIZE, N_EMBD), jnp.float32) * 0.02
    b_up = jax.random.normal(k4, (N_EMBD,), jnp.float32) * 0.01
    return w_down, b_down, w_up, b_up


def _ref(x, wd16, bd, wu16, bu, res=None):
    """Reference matching the kernel's bf16-operand / f32-accumulate math."""
    xb = x.astype(jnp.bfloat16)
    down = jnp.maximum(
        jnp.dot(xb, wd16, preferred_element_type=jnp.float32) + bd, 0.0)
    up = jnp.dot(down.astype(jnp.bfloat16), wu16,
                 preferred_element_type=jnp.float32) + bu
    if res is not None:
        up = up + res.astype(jnp.float32)
    return up


if __name__ == "__main__":
    key = jax.random.PRNGKey(0)
    kx, kp = jax.random.split(key)

    raw = init_params(kp)
    wd16, bd, wu16, bu = prepare_adapter_params(*raw)   # one-time hoisted cast

    # --- tiny batch (B < 16: exercises the single-tile pad fallback) -------
    B = 12
    x = jax.random.normal(kx, (B, N_EMBD), jnp.float32)
    out = jax.block_until_ready(adapter_forward(x, wd16, bd, wu16, bu))
    assert out.shape == (B, N_EMBD) and out.dtype == jnp.float32
    ref = _ref(x, wd16, bd, wu16, bu)
    assert jnp.allclose(out, ref, atol=2e-3, rtol=2e-3)
    # Looser sanity check vs pure-f32 math (bf16 operands cost ~1% rel error).
    ref_f32 = jnp.maximum(x @ raw[0] + raw[1], 0.0) @ raw[2] + raw[3]
    assert jnp.allclose(out, ref_f32, atol=5e-2, rtol=5e-2)

    # --- fused residual path (residual defaults to x) -----------------------
    out_res = jax.block_until_ready(
        adapter_forward(x, wd16, bd, wu16, bu, add_residual=True))
    assert jnp.allclose(out_res, _ref(x, wd16, bd, wu16, bu, res=x),
                        atol=2e-3, rtol=2e-3)

    # --- bf16 activation I/O (halves x/out HBM traffic) ---------------------
    x16 = x.astype(jnp.bfloat16)
    out16 = jax.block_until_ready(adapter_forward(x16, wd16, bd, wu16, bu))
    assert out16.dtype == jnp.bfloat16 and out16.shape == (B, N_EMBD)
    assert jnp.allclose(out16.astype(jnp.float32), _ref(x16, wd16, bd, wu16, bu),
                        atol=5e-2, rtol=5e-2)

    # --- partial last block, no padding (B=40, forced 2-core tile policy) ---
    B2 = 40
    x2 = jax.random.normal(jax.random.PRNGKey(1), (B2, N_EMBD), jnp.float32)
    out2 = jax.block_until_ready(
        adapter_forward(x2, wd16, bd, wu16, bu, num_cores=2))
    assert out2.shape == (B2, N_EMBD)
    assert bool(jnp.isfinite(out2).all())
    assert jnp.allclose(out2, _ref(x2, wd16, bd, wu16, bu), atol=2e-3, rtol=2e-3)

    print("KERNEL_OK")
</pallas_src>

<mosaic_0001>
module attributes {stable_mosaic.version = 11 : i64} {
  func.func @_adapter_kernel(%arg0: i32, %arg1: memref<16x512xf32, #tpu.memory_space<vmem>>, %arg2: memref<512x256xbf16, #tpu.memory_space<vmem>>, %arg3: memref<1x256xf32, #tpu.memory_space<vmem>>, %arg4: memref<256x512xbf16, #tpu.memory_space<vmem>>, %arg5: memref<1x512xf32, #tpu.memory_space<vmem>>, %arg6: memref<16x512xf32, #tpu.memory_space<vmem>>) attributes {dimension_semantics = [#tpu.dimension_semantics<parallel>], iteration_bounds = array<i64: 1>, scalar_prefetch = 0 : i64, scratch_operands = 0 : i64, tpu.core_type = #tpu.core_type<tc>, window_params = [{transform_indices = @transform_0, window_bounds = array<i64: 16, 512>}, {pipeline_mode = #tpu.pipeline_mode<synchronous>, transform_indices = @transform_1, window_bounds = array<i64: 512, 256>}, {pipeline_mode = #tpu.pipeline_mode<synchronous>, transform_indices = @transform_2, window_bounds = array<i64: 1, 256>}, {pipeline_mode = #tpu.pipeline_mode<synchronous>, transform_indices = @transform_3, window_bounds = array<i64: 256, 512>}, {pipeline_mode = #tpu.pipeline_mode<synchronous>, transform_indices = @transform_4, window_bounds = array<i64: 1, 512>}, {transform_indices = @transform_5, window_bounds = array<i64: 16, 512>}]} {
    %c0 = arith.constant 0 : index
    %c0_0 = arith.constant 0 : index
    %0 = vector.load %arg1[%c0, %c0_0] : memref<16x512xf32, #tpu.memory_space<vmem>>, vector<16x512xf32>
    %1 = arith.truncf %0 : vector<16x512xf32> to vector<16x512xbf16>
    %c0_1 = arith.constant 0 : index
    %c0_2 = arith.constant 0 : index
    %2 = vector.load %arg2[%c0_1, %c0_2] : memref<512x256xbf16, #tpu.memory_space<vmem>>, vector<512x256xbf16>
    %cst = arith.constant dense<0.000000e+00> : vector<16x256xf32>
    %3 = tpu.matmul %1, %2, %cst {dimension_numbers = #tpu.dot_dimension_numbers<[1], [0], [0], [1], [0, 0, 1, 1], [], []>} : vector<16x512xbf16>, vector<512x256xbf16>, vector<16x256xf32> -> vector<16x256xf32>
    %c0_3 = arith.constant 0 : index
    %c0_4 = arith.constant 0 : index
    %4 = vector.load %arg3[%c0_3, %c0_4] : memref<1x256xf32, #tpu.memory_space<vmem>>, vector<1x256xf32>
    %5 = vector.broadcast %4 : vector<1x256xf32> to vector<16x256xf32>
    %6 = arith.addf %3, %5 : vector<16x256xf32>
    %cst_5 = arith.constant 0.000000e+00 : f32
    %7 = vector.broadcast %cst_5 : f32 to vector<16x256xf32>
    %8 = arith.maximumf %6, %7 : vector<16x256xf32>
    %9 = arith.truncf %8 : vector<16x256xf32> to vector<16x256xbf16>
    %c0_6 = arith.constant 0 : index
    %c0_7 = arith.constant 0 : index
    %10 = vector.load %arg4[%c0_6, %c0_7] : memref<256x512xbf16, #tpu.memory_space<vmem>>, vector<256x512xbf16>
    %cst_8 = arith.constant dense<0.000000e+00> : vector<16x512xf32>
    %11 = tpu.matmul %9, %10, %cst_8 {dimension_numbers = #tpu.dot_dimension_numbers<[1], [0], [0], [1], [0, 0, 1, 1], [], []>} : vector<16x256xbf16>, vector<256x512xbf16>, vector<16x512xf32> -> vector<16x512xf32>
    %c0_9 = arith.constant 0 : index
    %c0_10 = arith.constant 0 : index
    %12 = vector.load %arg5[%c0_9, %c0_10] : memref<1x512xf32, #tpu.memory_space<vmem>>, vector<1x512xf32>
    %13 = vector.broadcast %12 : vector<1x512xf32> to vector<16x512xf32>
    %14 = arith.addf %11, %13 : vector<16x512xf32>
    %c0_11 = arith.constant 0 : index
    %c0_12 = arith.constant 0 : index
    %15 = vector.load %arg6[%c0_11, %c0_12] : memref<16x512xf32, #tpu.memory_space<vmem>>, vector<16x512xf32>
    tpu.vector_store %arg6[%c0_11, %c0_12], %14 {strides = array<i32>} : memref<16x512xf32, #tpu.memory_space<vmem>>, vector<16x512xf32>,
    return
  }
  func.func @transform_0(%arg0: i32) -> (i32, i32) {
    %c0_i32 = arith.constant 0 : i32
    %c0_i32_0 = arith.constant 0 : i32
    return %arg0, %c0_i32 : i32, i32
  }
  func.func @transform_1(%arg0: i32) -> (i32, i32) {
    %c0_i32 = arith.constant 0 : i32
    %c0_i32_0 = arith.constant 0 : i32
    %c0_i32_1 = arith.constant 0 : i32
    return %c0_i32, %c0_i32_0 : i32, i32
  }
  func.func @transform_2(%arg0: i32) -> (i32, i32) {
    %c0_i32 = arith.constant 0 : i32
    %c0_i32_0 = arith.constant 0 : i32
    %c0_i32_1 = arith.constant 0 : i32
    return %c0_i32, %c0_i32_0 : i32, i32
  }
  func.func @transform_3(%arg0: i32) -> (i32, i32) {
    %c0_i32 = arith.constant 0 : i32
    %c0_i32_0 = arith.constant 0 : i32
    %c0_i32_1 = arith.constant 0 : i32
    return %c0_i32, %c0_i32_0 : i32, i32
  }
  func.func @transform_4(%arg0: i32) -> (i32, i32) {
    %c0_i32 = arith.constant 0 : i32
    %c0_i32_0 = arith.constant 0 : i32
    %c0_i32_1 = arith.constant 0 : i32
    return %c0_i32, %c0_i32_0 : i32, i32
  }
  func.func @transform_5(%arg0: i32) -> (i32, i32) {
    %c0_i32 = arith.constant 0 : i32
    %c0_i32_0 = arith.constant 0 : i32
    return %arg0, %c0_i32 : i32, i32
  }
}

</mosaic_0001>

<bundles_post_ra>
// kernel: tpu_custom_call.1
= control target key start
LH: loop header
LB: loop body
LE: loop exit
PB: predicated region body
PF: predicated region fallthrough
CT: control target
= control target key end

     0   :  { %10 = vsyncpa [#allocation3], 0  ;;  %s1630_s0 = inlined_call_operand.hbm [shape: f32[16,512], index: 0, kind: input, shape index: {}]   ;;  %s1631_s1 = inlined_call_operand.hbm [shape: bf16[512,256], index: 1, kind: input, shape index: {}]   ;;  %s1632_s2 = inlined_call_operand.vmem [shape: f32[1,256], index: 2, kind: input, shape index: {}]   ;;  %s1633_s3 = inlined_call_operand.hbm [shape: bf16[256,512], index: 3, kind: input, shape index: {}]   ;;  %s1634_s4 = inlined_call_operand.vmem [shape: f32[1,512], index: 4, kind: input, shape index: {}]   ;;  %s1635_s5 = inlined_call_operand.hbm [shape: f32[16,512], index: 5, kind: output, shape index: {}]  }
   0x1   :  { %11 = vsyncpa [#allocation6], 0 }
   0x2   :  { %12 = vsyncpa [#allocation4], 0  ;;  %s1512_s18 = smov [#allocation5]   ;;  %s1418_s22 = scalar_lea.hbm %s1631_s1, 8192 }
   0x3   :  { %s30_s19 = sshll.u32 %s1512_s18, 4  ;;  %p1419_p0 = scmp.ne.s32.totalorder %s1631_s1, %s1418_s22  ;;  %s31_s19 = int_to_ptr.vmem [resolvable:$true] %s30_s19 }
   0x4   :  { %p1422_p1 = scmp.lt.u32.totalorder %s1418_s22, %s1631_s1 }
   0x6   :  { %p1424_p2 = pnand %p1422_p1, %p1419_p0 }
   0x8   :  { %1427 = shalt.err (!%p1424_p2)
}
   0x9   :  { %s1428_s27 = scalar_lea.vmem %s31_s19, 8192  ;;  %p1433_p4 = scmp.lt.s32.totalorder %s31_s19, %s31_s19 }
   0xa   :  { %p1429_p3 = scmp.ne.s32.totalorder %s31_s19, %s1428_s27  ;;  %p1434_p5 = scmp.lt.s32.totalorder %s1428_s27, %s1428_s27 }
   0xc   :  { %p1435_p6 = por %p1434_p5, %p1433_p4 }
   0xe   :  { %p1436_p7 = pnand %p1435_p6, %p1429_p3 }
  0x10   :  { %1439 = shalt.err (!%p1436_p7)
}
  0x11   :  { %s1513_s28 = smov 128   ;;  %s1514_s29 = smov 8  }
  0x12   :  { %36 = dma.hbm_to_vmem [thread:$0]  %s1631_s1, 8192, %s31_s19, [#allocation6], %s1513_s28, %s1513_s28, %s1514_s29  }
  0x13   :  { %s1515_s7 = smov [#allocation2]   ;;  %s1440_s11 = scalar_lea.hbm %s1630_s0, 1024 }
  0x14   :  { %s18_s8 = sshll.u32 %s1515_s7, 4  ;;  %p1441_p8 = scmp.ne.s32.totalorder %s1630_s0, %s1440_s11  ;;  %s19_s8 = int_to_ptr.vmem [resolvable:$true] %s18_s8 }
  0x15   :  { %p1444_p9 = scmp.lt.u32.totalorder %s1440_s11, %s1630_s0 }
  0x17   :  { %p1446_p10 = pnand %p1444_p9, %p1441_p8 }
  0x19   :  { %1449 = shalt.err (!%p1446_p10)
}
  0x1a   :  { %s1450_s16 = scalar_lea.vmem %s19_s8, 1024  ;;  %p1455_p12 = scmp.lt.s32.totalorder %s19_s8, %s19_s8 }
  0x1b   :  { %p1451_p11 = scmp.ne.s32.totalorder %s19_s8, %s1450_s16  ;;  %p1456_p13 = scmp.lt.s32.totalorder %s1450_s16, %s1450_s16 }
  0x1d   :  { %p1457_p0 = por %p1456_p13, %p1455_p12 }
  0x1f   :  { %p1458_p1 = pnand %p1457_p0, %p1451_p11 }
  0x21   :  { %1461 = shalt.err (!%p1458_p1)
}
  0x22   :  { %s1516_s1 = smov 512   ;;  %s1517_s17 = smov 32  }
  0x23   :  { %24 = dma.hbm_to_vmem [thread:$0]  %s1630_s0, 1024, %s19_s8, [#allocation3], %s1516_s1, %s1516_s1, %s1517_s17  }
  0x24   :  { %s1518_s20 = smov [#allocation7]   ;;  %s1462_s24 = scalar_lea.hbm %s1633_s3, 8192 }
  0x25   :  { %s44_s21 = sshll.u32 %s1518_s20, 4  ;;  %p1463_p2 = scmp.ne.s32.totalorder %s1633_s3, %s1462_s24  ;;  %s45_s21 = int_to_ptr.vmem [resolvable:$true] %s44_s21 }
  0x26   :  { %p1466_p3 = scmp.lt.u32.totalorder %s1462_s24, %s1633_s3 }
  0x28   :  { %p1468_p4 = pnand %p1466_p3, %p1463_p2 }
  0x2a   :  { %1471 = shalt.err (!%p1468_p4)
}
  0x2b   :  { %s1472_s29 = scalar_lea.vmem %s45_s21, 8192  ;;  %p1477_p6 = scmp.lt.s32.totalorder %s45_s21, %s45_s21 }
  0x2c   :  { %p1473_p5 = scmp.ne.s32.totalorder %s45_s21, %s1472_s29  ;;  %p1478_p7 = scmp.lt.s32.totalorder %s1472_s29, %s1472_s29 }
  0x2e   :  { %p1479_p8 = por %p1478_p7, %p1477_p6 }
  0x30   :  { %p1480_p9 = pnand %p1479_p8, %p1473_p5 }
  0x32   :  { %1483 = shalt.err (!%p1480_p9)
}
  0x33   :  { %s1519_s0 = smov 256   ;;  %s1520_s30 = smov 16  }
  0x34   :  { %50 = dma.hbm_to_vmem [thread:$0]  %s1633_s3, 8192, %s45_s21, [#allocation6], %s1519_s0, %s1519_s0, %s1520_s30  }
  0x35   :  { %1506 = dma.done.wait [#allocation3], 1024  }
  0x36   :  { %1507 = vsyncadd [#allocation3], 4294966272 }
  0x37   :  { %1508 = dma.done.wait [#allocation6], 16384  }
  0x38   :  { %1509 = vsyncadd [#allocation6], 4294950912  ;;  %v1226_v0 = vld [vmem:[#allocation5 + $0x4] ss:$8 sps:$4 sm:$0xff]   ;;  %v1228_v1 = vld [vmem:[#allocation5] ss:$8 sps:$4 sm:$0xff]  }
  0x39   :  { %470 = vmatprep.subr.bf16.mxu0 %v1226_v0  ;;  %v1229_v2 = vld [vmem:[#allocation5 + $0x14] ss:$8 sps:$4 sm:$0xff]   ;;  %v1231_v3 = vld [vmem:[#allocation5 + $0x10] ss:$8 sps:$4 sm:$0xff]   ;;  %v1232_v4 = vld [vmem:[#allocation5 + $0x24] ss:$8 sps:$4 sm:$0xff]  }
  0x3a   :  { %471 = vmatpush1.bf16.msra.mxu0 %v1228_v1  ;;  %v1234_v5 = vld [vmem:[#allocation5 + $0x20] ss:$8 sps:$4 sm:$0xff]   ;;  %v1235_v6 = vld [vmem:[#allocation5 + $0x34] ss:$8 sps:$4 sm:$0xff]   ;;  %v1237_v7 = vld [vmem:[#allocation5 + $0x30] ss:$8 sps:$4 sm:$0xff]  }
  0x3b   :  { %472 = vmatprep.subr.bf16.mxu0 %v1229_v2  ;;  %v1238_v8 = vld [vmem:[#allocation5 + $0x44] ss:$8 sps:$4 sm:$0xff]   ;;  %v1240_v9 = vld [vmem:[#allocation5 + $0x40] ss:$8 sps:$4 sm:$0xff]   ;;  %v1241_v10 = vld [vmem:[#allocation5 + $0x54] ss:$8 sps:$4 sm:$0xff]  }
  0x3c   :  { %v1243_v11 = vld [vmem:[#allocation5 + $0x50] ss:$8 sps:$4 sm:$0xff]   ;;  %v1244_v12 = vld [vmem:[#allocation5 + $0x64] ss:$8 sps:$4 sm:$0xff]   ;;  %v1246_v16 = vld [vmem:[#allocation5 + $0x60] ss:$8 sps:$4 sm:$0xff]  }
  0x3d   :  { %v63_v13 = vld [vmem:[#allocation2 + $0x8] sm:$0xff]  ;;  %v1247_v17 = vld [vmem:[#allocation5 + $0x74] ss:$8 sps:$4 sm:$0xff]   ;;  %v1249_v18 = vld [vmem:[#allocation5 + $0x70] ss:$8 sps:$4 sm:$0xff]  }
  0x3e   :  { %473 = vmatpush1.bf16.msra.mxu0 %v1231_v3  ;;  %v67_v14 = vld [vmem:[#allocation2 + $0x28] sm:$0xff]  ;;  %v1253_v21 = vld [vmem:[#allocation5 + $0x94] ss:$8 sps:$4 sm:$0xff]   ;;  %v1255_v22 = vld [vmem:[#allocation5 + $0x90] ss:$8 sps:$4 sm:$0xff]  }
  0x3f   :  { %474 = vmatprep.subr.bf16.mxu0 %v1232_v4  ;;  %v71_v15 = vpack.c.bf16 %v67_v14, %v63_v13  ;;  %v1250_v19 = vld [vmem:[#allocation5 + $0x84] ss:$8 sps:$4 sm:$0xff]   ;;  %v1252_v20 = vld [vmem:[#allocation5 + $0x80] ss:$8 sps:$4 sm:$0xff]   ;;  %v1259_v25 = vld [vmem:[#allocation5 + $0xb4] ss:$8 sps:$4 sm:$0xff]  }
  0x40   :  { %v1256_v23 = vld [vmem:[#allocation5 + $0xa4] ss:$8 sps:$4 sm:$0xff]   ;;  %v1258_v24 = vld [vmem:[#allocation5 + $0xa0] ss:$8 sps:$4 sm:$0xff]   ;;  %v1261_v26 = vld [vmem:[#allocation5 + $0xb0] ss:$8 sps:$4 sm:$0xff]  }
  0x41   :  { %502 = vmatprep.mubr.bf16.mxu0 %v71_v15  ;;  %v1262_v27 = vld [vmem:[#allocation5 + $0xc4] ss:$8 sps:$4 sm:$0xff]   ;;  %v1324_v29 = vld [vmem:[#allocation7] ss:$16 sps:$4 sm:$0xff]   ;;  %v1265_v32 = vld [vmem:[#allocation5 + $0xd4] ss:$8 sps:$4 sm:$0xff]  }
  0x42   :  { %475 = vmatpush1.bf16.msra.mxu0 %v1234_v5  ;;  %v1322_v28 = vld [vmem:[#allocation7 + $0x4] ss:$16 sps:$4 sm:$0xff]   ;;  %v1264_v30 = vld [vmem:[#allocation5 + $0xc0] ss:$8 sps:$4 sm:$0xff]   ;;  %v1267_v35 = vld [vmem:[#allocation5 + $0xd0] ss:$8 sps:$4 sm:$0xff]  }
  0x43   :  { %476 = vmatprep.subr.bf16.mxu0 %v1235_v6  ;;  %v1325_v31 = vld [vmem:[#allocation7 + $0x24] ss:$16 sps:$4 sm:$0xff]   ;;  %968 = vmatprep.subr.bf16.mxu1 %v1322_v28  ;;  %v1327_v33 = vld [vmem:[#allocation7 + $0x20] ss:$16 sps:$4 sm:$0xff]   ;;  %v65_v47 = vld [vmem:[#allocation2 + $0x18] sm:$0xff] }
  0x44   :  { %969 = vmatpush1.bf16.msra.mxu1 %v1324_v29  ;;  %v1328_v34 = vld [vmem:[#allocation7 + $0x44] ss:$16 sps:$4 sm:$0xff]   ;;  %v1330_v37 = vld [vmem:[#allocation7 + $0x40] ss:$16 sps:$4 sm:$0xff]   ;;  %v69_v48 = vld [vmem:[#allocation2 + $0x38] sm:$0xff] }
  0x45   :  { %970 = vmatprep.subr.bf16.mxu1 %v1325_v31  ;;  %v1268_v36 = vld [vmem:[#allocation5 + $0xe4] ss:$8 sps:$4 sm:$0xff]   ;;  %v1270_v39 = vld [vmem:[#allocation5 + $0xe0] ss:$8 sps:$4 sm:$0xff]   ;;  %v1271_v40 = vld [vmem:[#allocation5 + $0xf4] ss:$8 sps:$4 sm:$0xff]   ;;  %v73_v54 = vpack.c.bf16 %v69_v48, %v65_v47 }
  0x46   :  { %477 = vmatpush1.bf16.msra.mxu0 %v1237_v7  ;;  %v1331_v38 = vld [vmem:[#allocation7 + $0x64] ss:$16 sps:$4 sm:$0xff]   ;;  %v1273_v41 = vld [vmem:[#allocation5 + $0xf0] ss:$8 sps:$4 sm:$0xff]   ;;  %v1274_v50 = vld [vmem:[#allocation5 + $0x100] ss:$8 sps:$4 sm:$0xff]  }
  0x47   :  { %478 = vmatprep.subr.bf16.mxu0 %v1238_v8  ;;  %v1333_v42 = vld [vmem:[#allocation7 + $0x60] ss:$16 sps:$4 sm:$0xff]   ;;  %v1276_v43 = vld [vmem:[#allocation5 + $0x104] ss:$8 sps:$4 sm:$0xff]   ;;  %v1279_v53 = vld [vmem:[#allocation5 + $0x114] ss:$8 sps:$4 sm:$0xff]  }
  0x48   :  { %971 = vmatpush1.bf16.msra.mxu1 %v1327_v33  ;;  %v62_v44 = vld [vmem:[#allocation2] sm:$0xff]  ;;  %v1277_v57 = vld [vmem:[#allocation5 + $0x110] ss:$8 sps:$4 sm:$0xff]   ;;  %v1285_v62 = vld [vmem:[#allocation5 + $0x134] ss:$8 sps:$4 sm:$0xff]  }
  0x49   :  { %972 = vmatprep.subr.bf16.mxu1 %v1328_v34  ;;  %v1334_v45 = vld [vmem:[#allocation7 + $0x84] ss:$16 sps:$4 sm:$0xff]   ;;  %v1336_v49 = vld [vmem:[#allocation7 + $0x80] ss:$16 sps:$4 sm:$0xff]  }
  0x4a   :  { %479 = vmatpush1.bf16.msra.mxu0 %v1240_v9  ;;  %v66_v46 = vld [vmem:[#allocation2 + $0x20] sm:$0xff]  ;;  %v1283_v1 = vld [vmem:[#allocation5 + $0x130] ss:$8 sps:$4 sm:$0xff]   ;;  %v1291_v6 = vld [vmem:[#allocation5 + $0x154] ss:$8 sps:$4 sm:$0xff]  }
  0x4b   :  { %480 = vmatprep.subr.bf16.mxu0 %v1241_v10  ;;  %v70_v51 = vpack.c.bf16 %v66_v46, %v62_v44  ;;  %v1337_v52 = vld [vmem:[#allocation7 + $0xa4] ss:$16 sps:$4 sm:$0xff]   ;;  %v1339_v55 = vld [vmem:[#allocation7 + $0xa0] ss:$16 sps:$4 sm:$0xff]   ;;  %v1372_v44 = vld [vmem:[#allocation7 + $0xc] ss:$16 sps:$4 sm:$0xff]  }
  0x4c   :  { %973 = vmatpush1.bf16.msra.mxu1 %v1330_v37  ;;  %v1340_v56 = vld [vmem:[#allocation7 + $0xc4] ss:$16 sps:$4 sm:$0xff]   ;;  %v1342_v59 = vld [vmem:[#allocation7 + $0xc0] ss:$16 sps:$4 sm:$0xff]  }
  0x4d   :  { %974 = vmatprep.subr.bf16.mxu1 %v1331_v38  ;;  %v1282_v58 = vld [vmem:[#allocation5 + $0x124] ss:$8 sps:$4 sm:$0xff]   ;;  %v1280_v61 = vld [vmem:[#allocation5 + $0x120] ss:$8 sps:$4 sm:$0xff]   ;;  %v1289_v9 = vld [vmem:[#allocation5 + $0x150] ss:$8 sps:$4 sm:$0xff]  }
  0x4e   :  { %481 = vmatpush1.bf16.msra.mxu0 %v1243_v11  ;;  %v1343_v60 = vld [vmem:[#allocation7 + $0xe4] ss:$16 sps:$4 sm:$0xff]   ;;  %v1345_v63 = vld [vmem:[#allocation7 + $0xe0] ss:$16 sps:$4 sm:$0xff]  }
  0x4f   :  { %482 = vmatprep.subr.bf16.mxu0 %v1244_v12  ;;  %v1346_v0 = vld [vmem:[#allocation7 + $0x104] ss:$16 sps:$4 sm:$0xff]   ;;  %v1348_v3 = vld [vmem:[#allocation7 + $0x100] ss:$16 sps:$4 sm:$0xff]  }
  0x50   :  { %975 = vmatpush1.bf16.msra.mxu1 %v1333_v42  ;;  %v1288_v2 = vld [vmem:[#allocation5 + $0x144] ss:$8 sps:$4 sm:$0xff]   ;;  %v1286_v5 = vld [vmem:[#allocation5 + $0x140] ss:$8 sps:$4 sm:$0xff]   ;;  %v1297_v14 = vld [vmem:[#allocation5 + $0x174] ss:$8 sps:$4 sm:$0xff]  }
  0x51   :  { %976 = vmatprep.subr.bf16.mxu1 %v1334_v45  ;;  %v1349_v4 = vld [vmem:[#allocation7 + $0x124] ss:$16 sps:$4 sm:$0xff]   ;;  %v1351_v7 = vld [vmem:[#allocation7 + $0x120] ss:$16 sps:$4 sm:$0xff]   ;;  %v140_v45 = vlaneseq }
  0x52   :  { %483 = vmatpush1.bf16.msra.mxu0 %v1246_v16  ;;  %v1352_v8 = vld [vmem:[#allocation7 + $0x144] ss:$16 sps:$4 sm:$0xff]   ;;  %v1354_v11 = vld [vmem:[#allocation7 + $0x140] ss:$16 sps:$4 sm:$0xff]  }
  0x53   :  { %484 = vmatprep.subr.bf16.mxu0 %v1247_v17  ;;  %v1294_v10 = vld [vmem:[#allocation5 + $0x164] ss:$8 sps:$4 sm:$0xff]   ;;  %v1292_v13 = vld [vmem:[#allocation5 + $0x160] ss:$8 sps:$4 sm:$0xff]   ;;  %v1295_v17 = vld [vmem:[#allocation5 + $0x170] ss:$8 sps:$4 sm:$0xff]  }
  0x54   :  { %977 = vmatpush1.bf16.msra.mxu1 %v1336_v49  ;;  %v1355_v12 = vld [vmem:[#allocation7 + $0x164] ss:$16 sps:$4 sm:$0xff]   ;;  %v1357_v15 = vld [vmem:[#allocation7 + $0x160] ss:$16 sps:$4 sm:$0xff]   ;;  %v1591_v46 = vshrl.u32 %v140_v45, 7 }
  0x55   :  { %978 = vmatprep.subr.bf16.mxu1 %v1337_v52  ;;  %v1358_v16 = vld [vmem:[#allocation7 + $0x184] ss:$16 sps:$4 sm:$0xff]   ;;  %v1307_v28 = vld [vmem:[#allocation5 + $0x1b0] ss:$8 sps:$4 sm:$0xff]   ;;  %v1316_v34 = vld [vmem:[#allocation5 + $0x1e0] ss:$8 sps:$4 sm:$0xff]  }
  0x56   :  { %485 = vmatpush1.bf16.msra.mxu0 %v1249_v18  ;;  %v1300_v18 = vld [vmem:[#allocation5 + $0x184] ss:$8 sps:$4 sm:$0xff]   ;;  %v1315_v31 = vld [vmem:[#allocation5 + $0x1d4] ss:$8 sps:$4 sm:$0xff]   ;;  %v142_v47 = vsub.s32 0, %v1591_v46  ;;  %v146_v49 = vsub.s32 1, %v1591_v46 }
  0x57   :  { %486 = vmatprep.subr.bf16.mxu0 %v1250_v19  ;;  %v1360_v19 = vld [vmem:[#allocation7 + $0x180] ss:$16 sps:$4 sm:$0xff]   ;;  %v1312_v29 = vld [vmem:[#allocation5 + $0x1c4] ss:$8 sps:$4 sm:$0xff]   ;;  %v642_v45 = vsub.s32 3, %v1591_v46 }
  0x58   :  { %979 = vmatpush1.bf16.msra.mxu1 %v1339_v55  ;;  %v1318_v33 = vld [vmem:[#allocation5 + $0x1e4] ss:$8 sps:$4 sm:$0xff]   ;;  %v64_v37 = vld [vmem:[#allocation2 + $0x10] sm:$0xff]  ;;  %v138_v48 = vld [vmem:[%s1632_s2] sm:$0x3] }
  0x59   :  { %980 = vmatprep.subr.bf16.mxu1 %v1340_v56  ;;  %v68_v38 = vld [vmem:[#allocation2 + $0x30] sm:$0xff] }
  0x5a   :  { %487 = vmatpush1.bf16.msra.mxu0 %v1252_v20  ;;  %v1361_v20 = vld [vmem:[#allocation7 + $0x1a4] ss:$16 sps:$4 sm:$0xff]  }
  0x5b   :  { %488 = vmatprep.subr.bf16.mxu0 %v1253_v21  ;;  %v1298_v21 = vld [vmem:[#allocation5 + $0x180] ss:$8 sps:$4 sm:$0xff]   ;;  %v1367_v42 = vld [vmem:[#allocation7 + $0x1e4] ss:$16 sps:$4 sm:$0xff]  }
  0x5c   :  { %981 = vmatpush1.bf16.msra.mxu1 %v1342_v59 }
  0x5d   :  { %982 = vmatprep.subr.bf16.mxu1 %v1343_v60 }
  0x5e   :  { %489 = vmatpush1.bf16.msra.mxu0 %v1255_v22  ;;  %v1303_v22 = vld [vmem:[#allocation5 + $0x194] ss:$8 sps:$4 sm:$0xff]  }
  0x5f   :  { %490 = vmatprep.subr.bf16.mxu0 %v1256_v23  ;;  %v1363_v23 = vld [vmem:[#allocation7 + $0x1a0] ss:$16 sps:$4 sm:$0xff]  }
  0x60   :  { %983 = vmatpush1.bf16.msra.mxu1 %v1345_v63 }
  0x61   :  { %984 = vmatprep.subr.bf16.mxu1 %v1346_v0 }
  0x62   :  { %491 = vmatpush1.bf16.msra.mxu0 %v1258_v24  ;;  %v1301_v24 = vld [vmem:[#allocation5 + $0x190] ss:$8 sps:$4 sm:$0xff]  }
  0x63   :  { %492 = vmatprep.subr.bf16.mxu0 %v1259_v25  ;;  %v1306_v25 = vld [vmem:[#allocation5 + $0x1a4] ss:$8 sps:$4 sm:$0xff]  }
  0x64   :  { %985 = vmatpush1.bf16.msra.mxu1 %v1348_v3  ;;  %v1375_v3 = vld [vmem:[#allocation7 + $0x2c] ss:$16 sps:$4 sm:$0xff]  }
  0x65   :  { %986 = vmatprep.subr.bf16.mxu1 %v1349_v4  ;;  %v1373_v4 = vld [vmem:[#allocation7 + $0x28] ss:$16 sps:$4 sm:$0xff]  }
  0x66   :  { %493 = vmatpush1.bf16.msra.mxu0 %v1261_v26  ;;  %v1304_v26 = vld [vmem:[#allocation5 + $0x1a0] ss:$8 sps:$4 sm:$0xff]  }
  0x67   :  { %494 = vmatprep.subr.bf16.mxu0 %v1262_v27  ;;  %v1309_v27 = vld [vmem:[#allocation5 + $0x1b4] ss:$8 sps:$4 sm:$0xff]  }
  0x68   :  { %987 = vmatpush1.bf16.msra.mxu1 %v1351_v7  ;;  %v1381_v7 = vld [vmem:[#allocation7 + $0x6c] ss:$16 sps:$4 sm:$0xff]  }
  0x69   :  { %988 = vmatprep.subr.bf16.mxu1 %v1352_v8  ;;  %v1379_v8 = vld [vmem:[#allocation7 + $0x68] ss:$16 sps:$4 sm:$0xff]  }
  0x6a   :  { %495 = vmatpush1.bf16.msra.mxu0 %v1264_v30  ;;  %v1310_v30 = vld [vmem:[#allocation5 + $0x1c0] ss:$8 sps:$4 sm:$0xff]  }
  0x6b   :  { %496 = vmatprep.subr.bf16.mxu0 %v1265_v32  ;;  %v1313_v32 = vld [vmem:[#allocation5 + $0x1d0] ss:$8 sps:$4 sm:$0xff]  }
  0x6c   :  { %989 = vmatpush1.bf16.msra.mxu1 %v1354_v11  ;;  %v1387_v11 = vld [vmem:[#allocation7 + $0xac] ss:$16 sps:$4 sm:$0xff]  }
  0x6d   :  { %990 = vmatprep.subr.bf16.mxu1 %v1355_v12  ;;  %v1385_v12 = vld [vmem:[#allocation7 + $0xa8] ss:$16 sps:$4 sm:$0xff]  }
  0x6e   :  { %497 = vmatpush1.bf16.msra.mxu0 %v1267_v35  ;;  %v1321_v35 = vld [vmem:[#allocation5 + $0x1f4] ss:$8 sps:$4 sm:$0xff]  }
  0x6f   :  { %498 = vmatprep.subr.bf16.mxu0 %v1268_v36  ;;  %v1319_v36 = vld [vmem:[#allocation5 + $0x1f0] ss:$8 sps:$4 sm:$0xff]  }
  0x70   :  { %991 = vmatpush1.bf16.msra.mxu1 %v1357_v15  ;;  %v1393_v15 = vld [vmem:[#allocation7 + $0xec] ss:$16 sps:$4 sm:$0xff]  }
  0x71   :  { %992 = vmatprep.subr.bf16.mxu1 %v1358_v16  ;;  %v1391_v16 = vld [vmem:[#allocation7 + $0xe8] ss:$16 sps:$4 sm:$0xff]  }
  0x72   :  { %499 = vmatpush1.bf16.msra.mxu0 %v1270_v39  ;;  %v72_v39 = vpack.c.bf16 %v68_v38, %v64_v37 }
  0x73   :  { %500 = vmatprep.subr.bf16.mxu0 %v1271_v40  ;;  %v1364_v40 = vld [vmem:[#allocation7 + $0x1c4] ss:$16 sps:$4 sm:$0xff]  }
  0x74   :  { %993 = vmatpush1.bf16.msra.mxu1 %v1360_v19  ;;  %v1399_v19 = vld [vmem:[#allocation7 + $0x12c] ss:$16 sps:$4 sm:$0xff]  }
  0x75   :  { %994 = vmatprep.subr.bf16.mxu1 %v1361_v20  ;;  %v1397_v20 = vld [vmem:[#allocation7 + $0x128] ss:$16 sps:$4 sm:$0xff]  }
  0x76   :  { %501 = vmatpush1.bf16.msra.mxu0 %v1273_v41  ;;  %v1366_v41 = vld [vmem:[#allocation7 + $0x1c0] ss:$16 sps:$4 sm:$0xff]  }
  0x77   :  { %513 = vmatprep.subr.bf16.mxu0 %v1276_v43  ;;  %v1369_v43 = vld [vmem:[#allocation7 + $0x1e0] ss:$16 sps:$4 sm:$0xff]  }
  0x78   :  { %995 = vmatpush1.bf16.msra.mxu1 %v1363_v23  ;;  %v1405_v23 = vld [vmem:[#allocation7 + $0x16c] ss:$16 sps:$4 sm:$0xff]  }
  0x79   :  { %503 = vmatmul.mubr.bf16.vlgmr.msra.gmra.mrb[0].mxu0 %v70_v51  ;;  %996 = vmatprep.subr.bf16.mxu1 %v1364_v40  ;;  %v147_v51 = vrot.slane %v138_v48, %v146_v49 }
  0x7a   :  { %514 = vmatpush1.bf16.msra.mxu0 %v1274_v50  ;;  %545 = vmatprep.mubr.bf16.mxu0 %v73_v54  ;;  %v143_v50 = vrot.slane %v138_v48, %v142_v47 }
  0x7b   :  { %515 = vmatprep.subr.bf16.mxu0 %v1279_v53 }
  0x7c   :  { %997 = vmatpush1.bf16.msra.mxu1 %v1366_v41 }
  0x7d   :  { %998 = vmatprep.subr.bf16.mxu1 %v1367_v42 }
  0x7e   :  { %516 = vmatpush1.bf16.msra.mxu0 %v1277_v57 }
  0x7f   :  { %517 = vmatprep.subr.bf16.mxu0 %v1282_v58 }
  0x80   :  { %999 = vmatpush1.bf16.msra.mxu1 %v1369_v43 }
  0x81   :  { %1011 = vmatprep.subr.bf16.mxu1 %v1372_v44  ;;  %v638_v44 = vsub.s32 2, %v1591_v46 }
  0x82   :  { %518 = vmatpush1.bf16.msra.mxu0 %v1280_v61 }
  0x83   :  { %519 = vmatprep.subr.bf16.mxu0 %v1285_v62 }
  0x86   :  { %520 = vmatpush1.bf16.msra.mxu0 %v1283_v1 }
  0x87   :  { %521 = vmatprep.subr.bf16.mxu0 %v1288_v2  ;;  %v1370_v2 = vld [vmem:[#allocation7 + $0x8] ss:$16 sps:$4 sm:$0xff]  }
  0x8a   :  { %522 = vmatpush1.bf16.msra.mxu0 %v1286_v5  ;;  %v1378_v5 = vld [vmem:[#allocation7 + $0x4c] ss:$16 sps:$4 sm:$0xff]  }
  0x8b   :  { %523 = vmatprep.subr.bf16.mxu0 %v1291_v6  ;;  %v1376_v6 = vld [vmem:[#allocation7 + $0x48] ss:$16 sps:$4 sm:$0xff]  }
  0x8e   :  { %524 = vmatpush1.bf16.msra.mxu0 %v1289_v9  ;;  %v1384_v9 = vld [vmem:[#allocation7 + $0x8c] ss:$16 sps:$4 sm:$0xff]  }
  0x8f   :  { %525 = vmatprep.subr.bf16.mxu0 %v1294_v10  ;;  %v1382_v10 = vld [vmem:[#allocation7 + $0x88] ss:$16 sps:$4 sm:$0xff]  }
  0x92   :  { %526 = vmatpush1.bf16.msra.mxu0 %v1292_v13  ;;  %v1390_v13 = vld [vmem:[#allocation7 + $0xcc] ss:$16 sps:$4 sm:$0xff]  }
  0x93   :  { %527 = vmatprep.subr.bf16.mxu0 %v1297_v14  ;;  %v1388_v14 = vld [vmem:[#allocation7 + $0xc8] ss:$16 sps:$4 sm:$0xff]  }
  0x96   :  { %528 = vmatpush1.bf16.msra.mxu0 %v1295_v17  ;;  %v1396_v17 = vld [vmem:[#allocation7 + $0x10c] ss:$16 sps:$4 sm:$0xff]  }
  0x97   :  { %529 = vmatprep.subr.bf16.mxu0 %v1300_v18  ;;  %v1394_v18 = vld [vmem:[#allocation7 + $0x108] ss:$16 sps:$4 sm:$0xff]  }
  0x9a   :  { %530 = vmatpush1.bf16.msra.mxu0 %v1298_v21  ;;  %v1402_v21 = vld [vmem:[#allocation7 + $0x14c] ss:$16 sps:$4 sm:$0xff]  }
  0x9b   :  { %531 = vmatprep.subr.bf16.mxu0 %v1303_v22  ;;  %v1400_v22 = vld [vmem:[#allocation7 + $0x148] ss:$16 sps:$4 sm:$0xff]  }
  0x9e   :  { %532 = vmatpush1.bf16.msra.mxu0 %v1301_v24  ;;  %v1403_v24 = vld [vmem:[#allocation7 + $0x168] ss:$16 sps:$4 sm:$0xff]  }
  0x9f   :  { %533 = vmatprep.subr.bf16.mxu0 %v1306_v25  ;;  %v1408_v25 = vld [vmem:[#allocation7 + $0x18c] ss:$16 sps:$4 sm:$0xff]  }
  0xa2   :  { %534 = vmatpush1.bf16.msra.mxu0 %v1304_v26  ;;  %v1406_v26 = vld [vmem:[#allocation7 + $0x188] ss:$16 sps:$4 sm:$0xff]  }
  0xa3   :  { %535 = vmatprep.subr.bf16.mxu0 %v1309_v27  ;;  %v1411_v27 = vld [vmem:[#allocation7 + $0x1ac] ss:$16 sps:$4 sm:$0xff]  }
  0xa6   :  { %536 = vmatpush1.bf16.msra.mxu0 %v1307_v28  ;;  %v1409_v28 = vld [vmem:[#allocation7 + $0x1a8] ss:$16 sps:$4 sm:$0xff]  }
  0xa7   :  { %537 = vmatprep.subr.bf16.mxu0 %v1312_v29  ;;  %v1414_v29 = vld [vmem:[#allocation7 + $0x1cc] ss:$16 sps:$4 sm:$0xff]  }
  0xaa   :  { %538 = vmatpush1.bf16.msra.mxu0 %v1310_v30  ;;  %v1412_v30 = vld [vmem:[#allocation7 + $0x1c8] ss:$16 sps:$4 sm:$0xff]  }
  0xab   :  { %539 = vmatprep.subr.bf16.mxu0 %v1315_v31  ;;  %v1417_v31 = vld [vmem:[#allocation7 + $0x1ec] ss:$16 sps:$4 sm:$0xff]  }
  0xae   :  { %540 = vmatpush1.bf16.msra.mxu0 %v1313_v32  ;;  %v1415_v32 = vld [vmem:[#allocation7 + $0x1e8] ss:$16 sps:$4 sm:$0xff]  }
  0xaf   :  { %541 = vmatprep.subr.bf16.mxu0 %v1318_v33  ;;  %v626_v33 = vld [vmem:[%s1634_s4] sm:$0xf]  ;;  %s1521_s4 = smov [#allocation8]  }
  0xb0   :  { %v643_v48 = vrot.slane %v626_v33, %v642_v45  ;;  %s1067_s10 = sshll.u32 %s1521_s4, 4  ;;  %s1068_s10 = int_to_ptr.vmem [resolvable:$true] %s1067_s10 }
  0xb1   :  { %s1484_s11 = scalar_lea.vmem %s1068_s10, 1024  ;;  %p1489_p11 = scmp.lt.s32.totalorder %s1068_s10, %s1068_s10 }
  0xb2   :  { %542 = vmatpush1.bf16.msra.mxu0 %v1316_v34  ;;  %v631_v34 = vrot.slane %v626_v33, %v142_v47  ;;  %v639_v47 = vrot.slane %v626_v33, %v638_v44  ;;  %p1485_p10 = scmp.ne.s32.totalorder %s1068_s10, %s1484_s11  ;;  %p1490_p12 = scmp.lt.s32.totalorder %s1484_s11, %s1484_s11 }
  0xb3   :  { %543 = vmatprep.subr.bf16.mxu0 %v1321_v35  ;;  %v635_v35 = vrot.slane %v626_v33, %v146_v49 }
  0xb4   :  { %p1491_p13 = por %p1490_p12, %p1489_p11 }
  0xb6   :  { %544 = vmatpush1.bf16.msra.mxu0 %v1319_v36  ;;  %p1492_p0 = pnand %p1491_p13, %p1485_p10 }
  0xb9   :  { %546 = vmatmul.mubr.bf16.vlgmr.msra.gmra.mrb[0].mxu0 %v72_v39 }
 0x18c   :  { %v547_v52 = vpop.f32.mrb[0].mxu0 }
 0x18d   :  { %v1208_v53 = vadd.f32 %v547_v52, %v143_v50  ;;  %v549_v54 = vpop.f32.mrb[1].mxu0 }
 0x18e   :  { %v1209_v55 = vadd.f32 %v549_v54, %v147_v51  ;;  %v551_v56 = vpop.f32.mrb[2].mxu0 }
 0x18f   :  { %v1210_v57 = vadd.f32 %v551_v56, %v143_v50  ;;  %v553_v58 = vpop.f32.mrb[3].mxu0  ;;  %v556_v60 = vmax.f32 %v1208_v53, 0.0 }
 0x190   :  { %v1211_v59 = vadd.f32 %v553_v58, %v147_v51  ;;  %v557_v62 = vmax.f32 %v1209_v55, 0.0 }
 0x191   :  { %v558_v61 = vmax.f32 %v1210_v57, 0.0 }
 0x192   :  { %v559_v63 = vmax.f32 %v1211_v59, 0.0 }
 0x193   :  { %v1602_v0 = vpack.c.bf16 %v558_v61, %v556_v60 }
 0x194   :  { %v561_v1 = vpack.c.bf16 %v559_v63, %v557_v62 }
 0x196   :  { %1000 = vmatprep.mubr.bf16.mxu1 %v561_v1 }
 0x197   :  { %1001 = vmatmul.mubr.bf16.vlgmr.msra.gmra.mrb[0].mxu1 %v1602_v0 }
 0x198   :  { %1012 = vmatpush1.bf16.msra.mxu1 %v1370_v2  ;;  %1043 = vmatprep.mubr.bf16.mxu1 %v561_v1 }
 0x199   :  { %1013 = vmatprep.subr.bf16.mxu1 %v1375_v3 }
 0x19c   :  { %1014 = vmatpush1.bf16.msra.mxu1 %v1373_v4 }
 0x19d   :  { %1015 = vmatprep.subr.bf16.mxu1 %v1378_v5 }
 0x1a0   :  { %1016 = vmatpush1.bf16.msra.mxu1 %v1376_v6 }
 0x1a1   :  { %1017 = vmatprep.subr.bf16.mxu1 %v1381_v7 }
 0x1a4   :  { %1018 = vmatpush1.bf16.msra.mxu1 %v1379_v8 }
 0x1a5   :  { %1019 = vmatprep.subr.bf16.mxu1 %v1384_v9 }
 0x1a8   :  { %1020 = vmatpush1.bf16.msra.mxu1 %v1382_v10 }
 0x1a9   :  { %1021 = vmatprep.subr.bf16.mxu1 %v1387_v11 }
 0x1ac   :  { %1022 = vmatpush1.bf16.msra.mxu1 %v1385_v12 }
 0x1ad   :  { %1023 = vmatprep.subr.bf16.mxu1 %v1390_v13 }
 0x1b0   :  { %1024 = vmatpush1.bf16.msra.mxu1 %v1388_v14 }
 0x1b1   :  { %1025 = vmatprep.subr.bf16.mxu1 %v1393_v15 }
 0x1b4   :  { %1026 = vmatpush1.bf16.msra.mxu1 %v1391_v16 }
 0x1b5   :  { %1027 = vmatprep.subr.bf16.mxu1 %v1396_v17 }
 0x1b8   :  { %1028 = vmatpush1.bf16.msra.mxu1 %v1394_v18 }
 0x1b9   :  { %1029 = vmatprep.subr.bf16.mxu1 %v1399_v19 }
 0x1bc   :  { %1030 = vmatpush1.bf16.msra.mxu1 %v1397_v20 }
 0x1bd   :  { %1031 = vmatprep.subr.bf16.mxu1 %v1402_v21 }
 0x1c0   :  { %1032 = vmatpush1.bf16.msra.mxu1 %v1400_v22 }
 0x1c1   :  { %1033 = vmatprep.subr.bf16.mxu1 %v1405_v23 }
 0x1c4   :  { %1034 = vmatpush1.bf16.msra.mxu1 %v1403_v24 }
 0x1c5   :  { %1035 = vmatprep.subr.bf16.mxu1 %v1408_v25 }
 0x1c8   :  { %1036 = vmatpush1.bf16.msra.mxu1 %v1406_v26 }
 0x1c9   :  { %1037 = vmatprep.subr.bf16.mxu1 %v1411_v27 }
 0x1cc   :  { %1038 = vmatpush1.bf16.msra.mxu1 %v1409_v28 }
 0x1cd   :  { %1039 = vmatprep.subr.bf16.mxu1 %v1414_v29 }
 0x1d0   :  { %1040 = vmatpush1.bf16.msra.mxu1 %v1412_v30 }
 0x1d1   :  { %1041 = vmatprep.subr.bf16.mxu1 %v1417_v31 }
 0x1d4   :  { %1042 = vmatpush1.bf16.msra.mxu1 %v1415_v32 }
 0x1d7   :  { %1044 = vmatmul.mubr.bf16.vlgmr.msra.gmra.mrb[4].mxu1 %v1602_v0 }
 0x26a   :  { %v1002_v36 = vpop.f32.mrb[0].mxu1 }
 0x26b   :  { %v1003_v37 = vadd.f32 %v1002_v36, %v631_v34  ;;  %v1004_v38 = vpop.f32.mrb[1].mxu1 }
 0x26c   :  { %v1005_v39 = vadd.f32 %v1004_v38, %v635_v35  ;;  %v1006_v40 = vpop.f32.mrb[2].mxu1 }
 0x26d   :  { %1054 = vst [vmem:[#allocation8] sm:$0xff] %v1003_v37  ;;  %v1007_v41 = vadd.f32 %v1006_v40, %v631_v34  ;;  %v1008_v42 = vpop.f32.mrb[3].mxu1 }
 0x26e   :  { %1055 = vst [vmem:[#allocation8 + $0x8] sm:$0xff] %v1005_v39  ;;  %v1009_v43 = vadd.f32 %v1008_v42, %v635_v35 }
 0x26f   :  { %1058 = vst [vmem:[#allocation8 + $0x20] sm:$0xff] %v1007_v41 }
 0x270   :  { %1059 = vst [vmem:[#allocation8 + $0x28] sm:$0xff] %v1009_v43 }
 0x2aa   :  { %v1045_v50 = vpop.f32.mrb[4].mxu1 }
 0x2ab   :  { %v1046_v49 = vadd.f32 %v1045_v50, %v639_v47  ;;  %v1047_v51 = vpop.f32.mrb[5].mxu1 }
 0x2ac   :  { %v1048_v52 = vadd.f32 %v1047_v51, %v643_v48  ;;  %v1049_v53 = vpop.f32.mrb[6].mxu1 }
 0x2ad   :  { %1056 = vst [vmem:[#allocation8 + $0x10] sm:$0xff] %v1046_v49  ;;  %v1050_v54 = vadd.f32 %v1049_v53, %v639_v47  ;;  %v1051_v55 = vpop.f32.mrb[7].mxu1 }
 0x2ae   :  { %1057 = vst [vmem:[#allocation8 + $0x18] sm:$0xff] %v1048_v52  ;;  %v1052_v56 = vadd.f32 %v1051_v55, %v643_v48 }
 0x2af   :  { %1060 = vst [vmem:[#allocation8 + $0x30] sm:$0xff] %v1050_v54 }
 0x2b0   :  { %1061 = vst [vmem:[#allocation8 + $0x38] sm:$0xff] %v1052_v56 }
 0x2b1   :  { %1495 = shalt.err (!%p1492_p0)
}
 0x2b2   :  { %s1496_s14 = scalar_lea.hbm %s1635_s5, 1024 }
 0x2b3   :  { %p1497_p1 = scmp.ne.s32.totalorder %s1635_s5, %s1496_s14  ;;  %p1500_p2 = scmp.lt.u32.totalorder %s1496_s14, %s1635_s5 }
 0x2b5   :  { %p1502_p3 = pnand %p1500_p2, %p1497_p1 }
 0x2b7   :  { %1505 = shalt.err (!%p1502_p3)
}
 0x2b8   :  { %1073 = dma.vmem_to_hbm [thread:$0]  %s1068_s10, 1024, %s1635_s5, [#allocation4], %s1516_s1, %s1516_s1, %s1517_s17  }
 0x2b9   :  { %1510 = dma.done.wait [#allocation4], 1024  }
 0x2ba   :  { %1511 = vsyncadd [#allocation4], 4294966272 }
 0x2bb   :  { %1077 = vsyncpa [#allocation3], 1 }
 0x2bc   :  { %1078 = vsyncpa [#allocation6], 1 }
 0x2bd   :  { %1079 = vsyncpa [#allocation4], 1 }

</bundles_post_ra>
